<compile_context>
chip_gen: v6e
topology: v6e:2x2x1
jax: 0.10.0
libtpu: 0.0.40
codegen_flags: <defaults>
</compile_context>

<pallas_src>
import functools

import jax
import jax.numpy as jnp
from jax.experimental import pallas as pl
from jax.experimental.pallas import tpu as pltpu


# ---------------------------------------------------------------------------
# Kernel
# ---------------------------------------------------------------------------
def _meanpool_kernel(data_ref, mask_ref, out_ref, num_acc, den_acc, *,
                     n_total, tn, mask_seq_tail):
    # data_ref: (TB, TN, D)   mask_ref: (TB, 1, TN)   out_ref: (TB, 1, D)
    # num_acc : (TB, 1, D) f32 scratch   den_acc: (TB, 1, 1) f32 scratch
    k = pl.program_id(1)

    @pl.when(k == 0)
    def _init():
        num_acc[...] = jnp.zeros_like(num_acc)
        den_acc[...] = jnp.zeros_like(den_acc)

    d = data_ref[...]                               # native dtype (f32/bf16)
    m = mask_ref[...].astype(jnp.float32)           # (TB, 1, TN)

    if mask_seq_tail:
        # cdiv grid: last sequence tile may extend past N. Zero both the mask
        # lanes and the data sublanes beyond the valid range so stale VMEM
        # garbage (possibly NaN/Inf) cannot leak into the sums.
        rem = n_total - k * tn
        lane = jax.lax.broadcasted_iota(jnp.int32, m.shape, dimension=2)
        m = jnp.where(lane < rem, m, 0.0)
        sub = jax.lax.broadcasted_iota(jnp.int32, d.shape, dimension=1)
        d = jnp.where(sub < rem, d, jnp.zeros_like(d))

    # Masked row-sum on the MXU (idle in this memory-bound kernel):
    # (TB, 1, TN) @ (TB, TN, D) -> (TB, 1, D), accumulated in f32.
    num_acc[...] += jnp.einsum(
        'bkn,bnd->bkd', m.astype(d.dtype), d,
        preferred_element_type=jnp.float32)
    # Denominator: lane-axis sum of the mask tile.
    den_acc[...] += jnp.sum(m, axis=-1, keepdims=True)     # (TB, 1, 1)

    @pl.when(k == pl.num_programs(1) - 1)
    def _finalize():
        # One exact reciprocal per batch row, then a broadcast multiply.
        inv = pl.reciprocal(den_acc[...])
        out_ref[...] = (num_acc[...] * inv).astype(out_ref.dtype)


# ---------------------------------------------------------------------------
# Tile selection (VMEM-budget & generation aware)
# ---------------------------------------------------------------------------
def _round_up(x, m):
    return ((x + m - 1) // m) * m


def _sublane_multiple(itemsize):
    # packed sublane count per 32-bit word: f32 -> 8, bf16 -> 16, int8 -> 32
    return {4: 8, 2: 16, 1: 32}.get(itemsize, 8)


def _tile_bytes(tb, tn, d, data_itemsize, mask_itemsize):
    """VMEM bytes of one (data, mask) input tile pair, padding included."""
    d_lanes = _round_up(d, 128)
    data = tb * _round_up(tn, _sublane_multiple(data_itemsize)) * d_lanes * data_itemsize
    # mask block (tb, 1, tn): the size-1 sublane dim pads to the dtype's
    # sublane multiple, lanes pad to 128.
    mask = tb * _sublane_multiple(mask_itemsize) * mask_itemsize * _round_up(tn, 128)
    return data + mask


def _vmem_budget_and_cap():
    """(double-buffered input budget, physical VMEM capacity) for this chip."""
    cap = 64 * 1024 * 1024  # conservative fallback (v7x-class)
    try:
        cap = int(pltpu.get_tpu_info().vmem_capacity_bytes)
    except Exception:
        pass
    if cap >= 100 * 1024 * 1024:        # v5e / v6e class: 128 MiB physical
        budget = 48 * 1024 * 1024
    else:                               # v7x class: 64 MiB physical per TC
        budget = 24 * 1024 * 1024
    return budget, cap


def _pick_tiles(B, N, D, data_itemsize, mask_itemsize, budget, cap_batch_steps):
    """Pick (TB, TN): largest tiles whose double-buffered inputs fit `budget`.

    TN is either the full N (always layout-legal) or a multiple of 128 (the
    lane constraint of the (TB, 1, TN) mask block, which also satisfies the
    packed-sublane constraint of the data block for any dtype).
    """
    full_bytes = _tile_bytes(1, N, D, data_itemsize, mask_itemsize)
    if N <= 128 or 2 * full_bytes <= budget:
        tn = N
    else:
        unit = _tile_bytes(1, 128, D, data_itemsize, mask_itemsize)
        n_units = max(1, budget // (2 * unit))
        tn = min(_round_up(N, 128) // 128, int(n_units)) * 128
        if tn >= N:
            tn = N

    per_tb = _tile_bytes(1, tn, D, data_itemsize, mask_itemsize)
    tb = max(1, int(budget // (2 * per_tb)))
    tb = min(tb, B)
    if cap_batch_steps and B >= 2:
        # v7x: keep >= 2 steps on the "parallel" batch axis so both
        # TensorCores share the HBM stream of this memory-bound kernel.
        tb = min(tb, -(-B // 2))
    return tb, tn


# ---------------------------------------------------------------------------
# Wrapper
# ---------------------------------------------------------------------------
def mean_pool(data, mask, *, vmem_budget_bytes=None):
    """data: (B, N, D), mask: (B, N, 1) or (B, N)  ->  (B, D)."""
    B, N, D = data.shape
    if mask.ndim == 2:
        mask = mask[:, :, None]
    assert mask.shape == (B, N, 1)
    # TODO(synk): the PyTorch `mask is None` branch (denom = data.shape[-1]) is
    # not implemented; the module's forward requires a mask anyway (data * mask).

    if mask.dtype == jnp.bool_:
        # bool refs are awkward in Mosaic; the mask array is tiny, convert it.
        mask = mask.astype(jnp.float32)
    # Lane-major mask layout: (B, N, 1) -> (B, 1, N) is a free reshape (same
    # row-major order), no extra HBM pass and no wrapper-side dtype cast.
    mask_lane = jnp.reshape(mask, (B, 1, N))

    budget, cap = _vmem_budget_and_cap()
    if vmem_budget_bytes is not None:
        budget = int(vmem_budget_bytes)
    multi_tc = cap < 100 * 1024 * 1024      # v7x-class chips have 2 TCs

    data_is = jnp.dtype(data.dtype).itemsize
    mask_is = jnp.dtype(mask_lane.dtype).itemsize
    TB, TN = _pick_tiles(B, N, D, data_is, mask_is, budget, multi_tc)
    grid = (pl.cdiv(B, TB), pl.cdiv(N, TN))

    # Derive vmem_limit_bytes from the actual footprint (+ headroom) instead
    # of a hardcoded constant, and never exceed physical VMEM.
    in_tiles = _tile_bytes(TB, TN, D, data_is, mask_is)
    out_tile = TB * 8 * _round_up(D, 128) * 4
    scratch_bytes = TB * 8 * _round_up(D, 128) * 4 + TB * 8 * 128 * 4
    vmem_limit = 2 * in_tiles + 2 * out_tile + scratch_bytes + 2 * 1024 * 1024
    vmem_limit = int(min(max(vmem_limit, 8 * 1024 * 1024), cap))

    kernel = functools.partial(
        _meanpool_kernel, n_total=N, tn=TN, mask_seq_tail=(N % TN != 0))

    out = pl.pallas_call(
        kernel,
        out_shape=jax.ShapeDtypeStruct((B, 1, D), data.dtype),
        grid_spec=pltpu.PrefetchScalarGridSpec(
            num_scalar_prefetch=0,
            grid=grid,
            in_specs=[
                pl.BlockSpec((TB, TN, D), lambda b, k: (b, k, 0)),
                pl.BlockSpec((TB, 1, TN), lambda b, k: (b, 0, k)),
            ],
            out_specs=pl.BlockSpec((TB, 1, D), lambda b, k: (b, 0, 0)),
            scratch_shapes=[
                pltpu.VMEM((TB, 1, D), jnp.float32),   # numerator accumulator
                pltpu.VMEM((TB, 1, 1), jnp.float32),   # denominator accumulator
            ],
        ),
        compiler_params=pltpu.CompilerParams(
            # batch axis parallel (v7x 2-TC sharding); sequence axis reduces.
            dimension_semantics=("parallel", "arbitrary"),
            vmem_limit_bytes=vmem_limit,
        ),
    )(data, mask_lane)
    # matches `out.squeeze(1)` in the PyTorch module
    return jnp.squeeze(out, axis=1)


def mean_pool_ref(data, mask):
    """Pure-JAX reference mirroring the PyTorch forward."""
    masked = data * mask
    out = jnp.sum(masked, axis=1, keepdims=True)
    denom = jnp.sum(mask, axis=-2, keepdims=True)
    out = out / denom
    return jnp.squeeze(out, axis=1)


if __name__ == "__main__":
    key = jax.random.PRNGKey(0)
    k1, k2, k3, k4 = jax.random.split(key, 4)

    # Test 1: small shape, generation-aware default budget, single seq tile.
    B, N, D = 2, 8, 32
    data = jax.random.normal(k1, (B, N, D), dtype=jnp.float32)
    mask = (jax.random.uniform(k2, (B, N, 1)) > 0.3).astype(jnp.float32)
    mask = mask.at[:, 0, :].set(1.0)  # at least one valid position per batch
    out = mean_pool(data, mask)
    jax.block_until_ready(out)
    ref = mean_pool_ref(data, mask)
    assert out.shape == (B, D)
    assert jnp.allclose(out, ref, atol=1e-5, rtol=1e-5)

    # Test 2: tiny budget forces TN=128 (< N=200, non-dividing), exercising
    # the cdiv grid, masked sequence tail and multi-step accumulation.
    B2, N2, D2 = 3, 200, 128
    data2 = jax.random.normal(k3, (B2, N2, D2), dtype=jnp.float32)
    mask2 = (jax.random.uniform(k4, (B2, N2, 1)) > 0.5).astype(jnp.float32)
    mask2 = mask2.at[:, 0, :].set(1.0)
    out2 = mean_pool(data2, mask2, vmem_budget_bytes=128 * 1024)
    jax.block_until_ready(out2)
    ref2 = mean_pool_ref(data2, mask2)
    assert out2.shape == (B2, D2)
    assert jnp.allclose(out2, ref2, atol=1e-5, rtol=1e-5)

    print("KERNEL_OK")
</pallas_src>

<mosaic_0001>
module attributes {stable_mosaic.version = 11 : i64} {
  func.func @_meanpool_kernel(%arg0: i32, %arg1: i32, %arg2: memref<1x8x32xf32, #tpu.memory_space<vmem>>, %arg3: memref<1x1x8xf32, #tpu.memory_space<vmem>>, %arg4: memref<1x1x32xf32, #tpu.memory_space<vmem>>, %arg5: memref<1x1x32xf32, #tpu.memory_space<vmem>>, %arg6: memref<1x1x1xf32, #tpu.memory_space<vmem>>) attributes {dimension_semantics = [#tpu.dimension_semantics<parallel>, #tpu.dimension_semantics<arbitrary>], iteration_bounds = array<i64: 2, 1>, scalar_prefetch = 0 : i64, scratch_operands = 2 : i64, tpu.core_type = #tpu.core_type<tc>, window_params = [{transform_indices = @transform_0, window_bounds = array<i64: 1, 8, 32>}, {transform_indices = @transform_1, window_bounds = array<i64: 1, 1, 8>}, {transform_indices = @transform_2, window_bounds = array<i64: 1, 1, 32>}]} {
    %c0_i32 = arith.constant 0 : i32
    %0 = arith.cmpi eq, %arg1, %c0_i32 : i32
    %1 = arith.extui %0 : i1 to i32
    %c0_i32_0 = arith.constant 0 : i32
    %2 = arith.cmpi ne, %1, %c0_i32_0 : i32
    scf.if %2 {
      %cst_21 = arith.constant 0.000000e+00 : f32
      %17 = vector.broadcast %cst_21 : f32 to vector<1x1x32xf32>
      %c0_22 = arith.constant 0 : index
      %c0_23 = arith.constant 0 : index
      %c0_24 = arith.constant 0 : index
      %18 = vector.load %arg5[%c0_22, %c0_23, %c0_24] : memref<1x1x32xf32, #tpu.memory_space<vmem>>, vector<1x1x32xf32>
      tpu.vector_store %arg5[%c0_22, %c0_23, %c0_24], %17 {strides = array<i32>} : memref<1x1x32xf32, #tpu.memory_space<vmem>>, vector<1x1x32xf32>,
      %cst_25 = arith.constant 0.000000e+00 : f32
      %19 = vector.broadcast %cst_25 : f32 to vector<1x1x1xf32>
      %c0_26 = arith.constant 0 : index
      %c0_27 = arith.constant 0 : index
      %c0_28 = arith.constant 0 : index
      %20 = vector.load %arg6[%c0_26, %c0_27, %c0_28] : memref<1x1x1xf32, #tpu.memory_space<vmem>>, vector<1x1x1xf32>
      tpu.vector_store %arg6[%c0_26, %c0_27, %c0_28], %19 {strides = array<i32>} : memref<1x1x1xf32, #tpu.memory_space<vmem>>, vector<1x1x1xf32>,
    } else {
    }
    %c0 = arith.constant 0 : index
    %c0_1 = arith.constant 0 : index
    %c0_2 = arith.constant 0 : index
    %3 = vector.load %arg2[%c0, %c0_1, %c0_2] : memref<1x8x32xf32, #tpu.memory_space<vmem>>, vector<1x8x32xf32>
    %c0_3 = arith.constant 0 : index
    %c0_4 = arith.constant 0 : index
    %c0_5 = arith.constant 0 : index
    %4 = vector.load %arg3[%c0_3, %c0_4, %c0_5] : memref<1x1x8xf32, #tpu.memory_space<vmem>>, vector<1x1x8xf32>
    %c0_6 = arith.constant 0 : index
    %c0_7 = arith.constant 0 : index
    %c0_8 = arith.constant 0 : index
    %5 = vector.load %arg5[%c0_6, %c0_7, %c0_8] : memref<1x1x32xf32, #tpu.memory_space<vmem>>, vector<1x1x32xf32>
    "tpu.trace_start"() <{level = 10 : i32, message = "bkn,bnd->bkd"}> : () -> ()
    %cst = arith.constant dense<0.000000e+00> : vector<1x1x32xf32>
    %6 = tpu.matmul %4, %3, %cst {dimension_numbers = #tpu.dot_dimension_numbers<[2], [1], [1], [2], [0, 0, 0, 1, 1, 2], [0], [0]>} : vector<1x1x8xf32>, vector<1x8x32xf32>, vector<1x1x32xf32> -> vector<1x1x32xf32>
    "tpu.trace_stop"() : () -> ()
    %7 = arith.addf %5, %6 : vector<1x1x32xf32>
    %c0_9 = arith.constant 0 : index
    %c0_10 = arith.constant 0 : index
    %c0_11 = arith.constant 0 : index
    %8 = vector.load %arg5[%c0_9, %c0_10, %c0_11] : memref<1x1x32xf32, #tpu.memory_space<vmem>>, vector<1x1x32xf32>
    tpu.vector_store %arg5[%c0_9, %c0_10, %c0_11], %7 {strides = array<i32>} : memref<1x1x32xf32, #tpu.memory_space<vmem>>, vector<1x1x32xf32>,
    %c0_12 = arith.constant 0 : index
    %c0_13 = arith.constant 0 : index
    %c0_14 = arith.constant 0 : index
    %9 = vector.load %arg6[%c0_12, %c0_13, %c0_14] : memref<1x1x1xf32, #tpu.memory_space<vmem>>, vector<1x1x1xf32>
    %cst_15 = arith.constant dense<0.000000e+00> : vector<1x1xf32>
    %10 = vector.multi_reduction <add>, %4, %cst_15 [2] : vector<1x1x8xf32> to vector<1x1xf32>
    %11 = vector.shape_cast %10 : vector<1x1xf32> to vector<1x1x1xf32>
    %12 = arith.addf %9, %11 : vector<1x1x1xf32>
    %c0_16 = arith.constant 0 : index
    %c0_17 = arith.constant 0 : index
    %c0_18 = arith.constant 0 : index
    %13 = vector.load %arg6[%c0_16, %c0_17, %c0_18] : memref<1x1x1xf32, #tpu.memory_space<vmem>>, vector<1x1x1xf32>
    tpu.vector_store %arg6[%c0_16, %c0_17, %c0_18], %12 {strides = array<i32>} : memref<1x1x1xf32, #tpu.memory_space<vmem>>, vector<1x1x1xf32>,
    %c0_i32_19 = arith.constant 0 : i32
    %14 = arith.cmpi eq, %arg1, %c0_i32_19 : i32
    %15 = arith.extui %14 : i1 to i32
    %c0_i32_20 = arith.constant 0 : i32
    %16 = arith.cmpi ne, %15, %c0_i32_20 : i32
    scf.if %16 {
      %c0_21 = arith.constant 0 : index
      %c0_22 = arith.constant 0 : index
      %c0_23 = arith.constant 0 : index
      %17 = vector.load %arg6[%c0_21, %c0_22, %c0_23] : memref<1x1x1xf32, #tpu.memory_space<vmem>>, vector<1x1x1xf32>
      %18 = tpu.reciprocal %17 : vector<1x1x1xf32> -> vector<1x1x1xf32>
      %c0_24 = arith.constant 0 : index
      %c0_25 = arith.constant 0 : index
      %c0_26 = arith.constant 0 : index
      %19 = vector.load %arg5[%c0_24, %c0_25, %c0_26] : memref<1x1x32xf32, #tpu.memory_space<vmem>>, vector<1x1x32xf32>
      %20 = vector.broadcast %18 : vector<1x1x1xf32> to vector<1x1x32xf32>
      %21 = arith.mulf %19, %20 : vector<1x1x32xf32>
      %c0_27 = arith.constant 0 : index
      %c0_28 = arith.constant 0 : index
      %c0_29 = arith.constant 0 : index
      %22 = vector.load %arg4[%c0_27, %c0_28, %c0_29] : memref<1x1x32xf32, #tpu.memory_space<vmem>>, vector<1x1x32xf32>
      tpu.vector_store %arg4[%c0_27, %c0_28, %c0_29], %21 {strides = array<i32>} : memref<1x1x32xf32, #tpu.memory_space<vmem>>, vector<1x1x32xf32>,
    } else {
    }
    return
  }
  func.func @transform_0(%arg0: i32, %arg1: i32) -> (i32, i32, i32) {
    %c0_i32 = arith.constant 0 : i32
    %c0_i32_0 = arith.constant 0 : i32
    return %arg0, %arg1, %c0_i32 : i32, i32, i32
  }
  func.func @transform_1(%arg0: i32, %arg1: i32) -> (i32, i32, i32) {
    %c0_i32 = arith.constant 0 : i32
    %c0_i32_0 = arith.constant 0 : i32
    return %arg0, %c0_i32, %arg1 : i32, i32, i32
  }
  func.func @transform_2(%arg0: i32, %arg1: i32) -> (i32, i32, i32) {
    %c0_i32 = arith.constant 0 : i32
    %c0_i32_0 = arith.constant 0 : i32
    %c0_i32_1 = arith.constant 0 : i32
    return %arg0, %c0_i32, %c0_i32_0 : i32, i32, i32
  }
}

</mosaic_0001>

<bundles_post_ra>
// kernel: tpu_custom_call.1
= control target key start
LH: loop header
LB: loop body
LE: loop exit
PB: predicated region body
PF: predicated region fallthrough
CT: control target
= control target key end

     0   :  { %7 = vsyncpa [#allocation5], 0  ;;  %s858_s0 = inlined_call_operand.hbm [shape: f32[2,8,32], index: 0, kind: input, shape index: {}]   ;;  %s859_s1 = inlined_call_operand.hbm [shape: f32[2,1,8], index: 1, kind: input, shape index: {}]   ;;  %s860_s2 = inlined_call_operand.hbm [shape: f32[2,1,32], index: 2, kind: output, shape index: {}]  }
   0x1   :  { %9 = vsyncpa [#allocation5 + $0x1], 0 }
   0x2   :  { %10 = vsyncpa [#allocation8], 0 }
   0x3   :  { %12 = vsyncpa [#allocation8 + $0x1], 0 }
   0x4   :  { %13 = vsyncpa [#allocation6], 0 }
   0x5   :  { %15 = vsyncpa [#allocation6 + $0x1], 0  ;;  %s688_s9 = smov 0   ;;  %s690_s10 = smov 0  }
   0x6   :  { %s692_s11 = smov 0   ;;  %s694_s12 = smov 0  }
   0x7   :  { %s696_s13 = smov 0   ;;  %s698_s14 = smov 0  }
   0x8 LB: > { %s432_s15 = sadd.s32 4294967295, %s665_s14   ;;  %s433_s16 = sadd.s32 4294967294, %s665_s14   ;;  %s665_s14 = sphi %s698_s14, %s21_s14   ;;  %s661_s13 = sphi %s696_s13, %s872_s13   ;;  %s657_s12 = sphi %s694_s12, %s871_s12   ;;  %s653_s11 = sphi %s692_s11, %s870_s11   ;;  %s649_s10 = sphi %s690_s10, %s869_s10   ;;  %s645_s9 = sphi %s688_s9, %s868_s9  }
   0x9   : > { %s33_s17 = sadd.s32 1, %s661_s13  ;;  %s42_s18 = sadd.s32 1, %s653_s11 }
   0xa   : > { %p35_p0 = scmp.ge.s32.totalorder %s33_s17, 2  ;;  %p49_p1 = scmp.ne.s32.totalorder %s653_s11, %s649_s10 }
   0xb   : > { %p50_p2 = scmp.eq.s32.totalorder %s665_s14, 0  ;;  %p55_p3 = scmp.ne.s32.totalorder %s649_s10, %s645_s9 }
   0xc   : > { %s874_s17 = smov (%p35_p0, %s33_s17), 0  ;;  %p56_p5 = scmp.eq.s32.totalorder %s432_s15, 0 }
   0xd   : > { %p729_p4 = por %p50_p2, %p49_p1  ;;  %s37_s20 = ssub.s32 %s661_s13, %s874_s17 }
   0xe   : > { %p107_p6 = scmp.eq.s32.totalorder %s432_s15, 1  ;;  %p40_p7 = scmp.eq.s32.totalorder %s37_s20, 0 }
   0xf   : > { %p735_p8 = por %p56_p5, %p55_p3  ;;  %p113_p10 = scmp.eq.s32.totalorder %s433_s16, 1 }
  0x10   : > { %p739_p9 = por %p107_p6, %p49_p1  ;;  %p469_p13 = scmp.lt.s32.totalorder %s665_s14, 2 }
  0x11   : > { %s744_s23 = scalar_select %p40_p7, %s653_s11, %s42_s18  }
  0x12   : > { %p746_p11 = por %p113_p10, %p55_p3  ;;  %s753_s25 = sand.u32 1, %s653_s11  }
  0x13   : > { %s436_s26 = sshll.u32 %s753_s25, 3  ;;  %s437_s27 = sshll.u32 %s661_s13, 7 }
  0x14   : > { %s143_s30 = scalar_lea.hbm %s858_s0, %s437_s27  ;;  %s137_s3 = scalar_lea.vmem [#allocation4], %s436_s26 }
  0x15   : > { %s145_s4 = sshll.u32 %s137_s3, 4  ;;  %p762_p0 = pnand %p469_p13, %p729_p4  ;;  %s146_s4 = int_to_ptr.vmem [resolvable:$true] %s145_s4 }
  0x16   : > { %p439_p1 = scmp.ge.s32.totalorder %s665_s14, 1  ;;  %p168_p2 = scmp.lt.s32.totalorder %s665_s14, 3 }
  0x17   : > { %s134_s6 = scalar_lea.sflag [#allocation5], %s753_s25  ;;  %p527_p3 = pneg %p762_p0 }
  0x18   : > { %s538_s7 = scalar_lea.vmem %s146_s4, 128  ;;  %s667_s8 = smov [#allocation4]  }
  0x19   : > { %p539_p5 = scmp.ne.s32.totalorder %s146_s4, %s538_s7  ;;  %s543_s15 = sshll.u32 %s667_s8, 4  ;;  %s544_s15 = int_to_ptr.vmem [resolvable:$false] %s543_s15 }
  0x1a   : > { %s545_s16 = scalar_lea.vmem %s544_s15, 256  ;;  %p546_p4 = scmp.lt.s32.totalorder %s146_s4, %s544_s15 }
  0x1b   : > { %p541_p6 = pnand %p539_p5, %p527_p3  ;;  %p547_p10 = scmp.lt.s32.totalorder %s545_s16, %s538_s7 }
  0x1d   : > { %p542_p7 = pneg %p541_p6  ;;  %p548_p13 = por %p547_p10, %p546_p4 }
  0x1f   : > { %p549_p12 = pnand %p548_p13, %p542_p7 }
  0x21   : > { %552 = shalt.err (!%p549_p12)
}
  0x22   : > { %461 = dma.hbm_to_vmem [thread:$0]  (!%p762_p0), %s143_s30, 128, %s146_s4, %s134_s6  }
  0x23   : > { %p780_p5 = pnand %p439_p1, %p168_p2  ;;  %s438_s19 = sshll.u32 %s661_s13, 4 }
  0x24   : > { %s155_s20 = scalar_lea.vmem [#allocation7], %s753_s25  ;;  %s161_s29 = scalar_lea.hbm %s859_s1, %s438_s19 }
  0x25   : > { %s163_s26 = sshll.u32 %s155_s20, 4  ;;  %s153_s3 = scalar_lea.sflag [#allocation8], %s753_s25  ;;  %s164_s26 = int_to_ptr.vmem [resolvable:$true] %s163_s26 }
  0x26   : > { %s566_s7 = scalar_lea.vmem %s164_s26, 16  ;;  %s668_s30 = smov [#allocation7]  }
  0x27   : > { %p567_p12 = scmp.ne.s32.totalorder %s164_s26, %s566_s7  ;;  %s571_s4 = sshll.u32 %s668_s30, 4  ;;  %s572_s4 = int_to_ptr.vmem [resolvable:$false] %s571_s4 }
  0x28   : > { %s573_s6 = scalar_lea.vmem %s572_s4, 32  ;;  %p574_p1 = scmp.lt.s32.totalorder %s164_s26, %s572_s4 }
  0x29   : > { %p569_p6 = pnand %p567_p12, %p527_p3  ;;  %p575_p2 = scmp.lt.s32.totalorder %s573_s6, %s566_s7 }
  0x2b   : > { %p570_p7 = pneg %p569_p6  ;;  %p576_p4 = por %p575_p2, %p574_p1 }
  0x2d   : > { %p577_p10 = pnand %p576_p4, %p570_p7 }
  0x2f   : > { %580 = shalt.err (!%p577_p10)
}
  0x30   : > { %464 = dma.hbm_to_vmem [thread:$0]  (!%p762_p0), %s161_s29, 16, %s164_s26, %s153_s3  }
  0x31   : > { %172 = sbr.rel (%p780_p5) target bundleno = 363 (0x16b), region = 28  ;;  %s798_s25 = sand.u32 (!%p780_p5), 1, %s649_s10  }
  0x32   : > { %s440_s8 = sshll.u32 (!%p780_p5), %s798_s25, 3  ;;  %s175_s15 = scalar_lea.sflag (!%p780_p5), [#allocation5], %s798_s25 }
  0x33   : > { %s178_s16 = scalar_lea.vmem (!%p780_p5), [#allocation4], %s440_s8 }
  0x36   : > { %632 = dma.done.wait (%p735_p8), %s175_s15, 128  }
  0x37   : > { %634 = vsyncadd (%p735_p8), %s175_s15, 4294967168  ;;  %s184_s5 = scalar_lea.sflag [#allocation8], %s798_s25  ;;  %s186_s18 = scalar_lea.vmem [#allocation7], %s798_s25 }
  0x38   : > { %636 = dma.done.wait (%p735_p8), %s184_s5, 16  }
  0x39   : > { %638 = vsyncadd (%p735_p8), %s184_s5, 4294967280  ;;  %vm214_vm0 = vcmask 253952   ;;  %vm216_vm1 = vcmask 0   ;;  %v669_v0 = vmov 0.0   ;;  %vm670_vm2 = vmmov 0   ;;  %v218_v2 = vld [vmem:[%s178_s16] sm:$0xff] }
  0x3a   : > { %215 = vst.msk [vmem:[#allocation2] sm:$0x1] %vm214_vm0, %v669_v0  ;;  %447 = vmatprep.subr.mxu0 %v669_v0  ;;  %449 = vmatprep.mubr.msk.f32.mxu0 %vm670_vm2, %v669_v0  ;;  %vm299_vm3 = vcmask 57344   ;;  %vm221_vm4 = vcmask 64512   ;;  %v219_v1 = vld [vmem:[%s186_s18] sm:$0x1]  ;;  %v317_v14 = vlaneseq }
  0x3b   : > { %217 = vst.msk [vmem:[#allocation3] sm:$0x1] %vm216_vm1, %v669_v0  ;;  %v300_v3 = vsel %vm299_vm3, %v219_v1, 0.0  ;;  %448 = vmatpush3.msra.mxu0 %v218_v2  ;;  %v671_v4 = vmov 0   ;;  %s442_s21 = sshll.u32 %s657_s12, 4  ;;  %s209_s19 = scalar_lea.vmem [#allocation9], %s798_s25 }
  0x3c   : > { %301 = vadd.xlane.f32.xlu0 %v300_v3  ;;  %450 = vmatmul.mubr.msk.f32.vlgmr.msra.gmra.mxu0 %vm221_vm4, %v219_v1  ;;  %v318_v15 = vshrl.u32 %v317_v14, 7  ;;  %s336_s20 = sshll.u32 %s209_s19, 4  ;;  %s334_s28 = scalar_lea.hbm %s860_s2, %s442_s21  ;;  %s337_s20 = int_to_ptr.vmem [resolvable:$true] %s336_s20 }
  0x3d   : > { %522 = vset.pattern.permute.xlu0 %v671_v4  ;;  %s324_s29 = scalar_lea.sflag [#allocation6], %s798_s25  ;;  %s581_s3 = scalar_lea.vmem %s337_s20, 16 }
  0x3e   : > { %v319_v16 = vsub.s32 0, %v318_v15  ;;  %p582_p8 = scmp.ne.s32.totalorder %s337_s20, %s581_s3  ;;  %s672_s7 = smov [#allocation9]  }
  0x3f   : > { %s585_s30 = sshll.u32 %s672_s7, 4  ;;  %s586_s30 = int_to_ptr.vmem [resolvable:$false] %s585_s30 }
  0x40   : > { %p583_p0 = pnand %p582_p8, %p739_p9  ;;  %s587_s12 = scalar_lea.vmem %s586_s30, 32 }
  0x41   : > { %v220_v10 = vld [vmem:[#allocation2] sm:$0x1]  ;;  %p588_p13 = scmp.lt.s32.totalorder %s337_s20, %s586_s30  ;;  %p589_p5 = scmp.lt.s32.totalorder %s587_s12, %s581_s3 }
  0x42   : > { %v298_v5 = vld [vmem:[#allocation3] sm:$0x1]  ;;  %p584_p3 = pneg %p583_p0 }
  0x43   : > { %p590_p12 = por %p589_p5, %p588_p13 }
  0x45   : > { %p591_p6 = pnand %p590_p12, %p584_p3 }
  0xc5   : > { %v302_v6 = vpop.xlane.xlu0 %301 }
  0xc6   : > { %v303_v7 = vadd.f32 %v302_v6, %v298_v5 }
  0xc8   : > { %305 = vst.msk [vmem:[#allocation3] sm:$0x1] %vm216_vm1, %v303_v7 }
  0xcf   : > { %v309_v8 = vld [vmem:[#allocation3] sm:$0x1] }
  0xd0   : > { %523 = vrcp.f32 %v309_v8 }
  0xdd   : > { %v524_v9 = vpop.eup %523 }
  0xde   : > { %314 = vperm.xlu0 %522, %v524_v9  }
  0xfc   : > { %v291_v11 = vpop.f32.mrf.mxu0 }
  0xfd   : > { %v295_v12 = vadd.f32 %v291_v11, %v220_v10 }
  0xfe   : > { %v451_v13 = vpop.f32.mrf.mxu0 }
  0xff   : > { %297 = vst.msk [vmem:[#allocation2] sm:$0x1] %vm214_vm0, %v295_v12 }
 0x106   : > { %v311_v18 = vld [vmem:[#allocation2] sm:$0x1] }
 0x159   : > { %v315_v17 = vpop.permute.xlu0 %314 }
 0x15a   : > { %v320_v19 = vrot.slane %v315_v17, %v319_v16 }
 0x15c   : > { %v321_v20 = vmul.f32 %v320_v19, %v311_v18 }
 0x15e   : > { %322 = vst.msk [vmem:[%s209_s19] sm:$0x1] %vm214_vm0, %v321_v20 }
 0x15f   : > { %594 = shalt.err (!%p591_p6)
}
 0x160   : > { %s595_s4 = scalar_lea.hbm %s334_s28, 16  ;;  %s599_s8 = scalar_lea.hbm %s860_s2, 32 }
 0x161   : > { %p596_p7 = scmp.ne.s32.totalorder %s334_s28, %s595_s4  ;;  %p600_p4 = scmp.lt.s32.totalorder %s334_s28, %s860_s2 }
 0x162   : > { %p601_p10 = scmp.lt.s32.totalorder %s599_s8, %s595_s4 }
 0x163   : > { %p597_p1 = pnand %p596_p7, %p739_p9 }
 0x164   : > { %p602_p8 = por %p601_p10, %p600_p4 }
 0x165   : > { %p598_p2 = pneg %p597_p1 }
 0x167   : > { %p603_p0 = pnand %p602_p8, %p598_p2 }
 0x169   : > { %606 = shalt.err (!%p603_p0)
}
 0x16a   : > { %456 = dma.vmem_to_hbm [thread:$0]  (%p739_p9), %s337_s20, 16, %s334_s28, %s324_s29  }
 0x16b PF: > { %s348_s5 = sand.u32 1, %s645_s9   ;;  %p867_p3 = scmp.ge.s32.totalorder %s665_s14, 2 }
 0x16c   : > { %s349_s18 = scalar_lea.sflag [#allocation6], %s348_s5 }
 0x16d   : > { %p466_p13 = pnand %p867_p3, %p746_p11 }
 0x16f   : > { %p467_p5 = pneg %p466_p13 }
 0x171   : > { %640 = dma.done.wait (%p467_p5), %s349_s18, 16  }
 0x172   : > { %642 = vsyncadd (%p467_p5), %s349_s18, 4294967280  ;;  %s21_s14 = sadd.s32 1, %s665_s14   ;;  %s868_s9 = smov %s649_s10 }
 0x173   : > { %p18_p12 = scmp.ge.s32.totalorder %s21_s14, 4   ;;  %s869_s10 = smov %s653_s11 }
 0x174   : > { %s870_s11 = smov %s744_s23  ;;  %s871_s12 = smov %s661_s13 }
 0x175   : > { %s872_s13 = smov %s874_s17  ;;  %20 = sbr.rel (!%p18_p12) target bundleno = 8 (0x8), region = 94 }
 0x17a   :  { %353 = vsyncpa [#allocation5], 1 }
 0x17b   :  { %355 = vsyncpa [#allocation5 + $0x1], 1 }
 0x17c   :  { %356 = vsyncpa [#allocation8], 1 }
 0x17d   :  { %358 = vsyncpa [#allocation8 + $0x1], 1 }
 0x17e   :  { %359 = vsyncpa [#allocation6], 1 }
 0x17f   :  { %361 = vsyncpa [#allocation6 + $0x1], 1 }

</bundles_post_ra>
